<compile_context>
chip_gen: v7x
topology: tpu7x:2x2x1
jax: 0.10.0
libtpu: 0.0.40
codegen_flags: <defaults>
</compile_context>

<pallas_src>
import jax
import jax.numpy as jnp
from jax.experimental import pallas as pl
from jax.experimental.pallas import tpu as pltpu


def _round_up(x, m):
    return (x + m - 1) // m * m


def _gen_fused_kernel(x_ref, w1_ref, b1_ref, w2_ref, b2_ref,
                      w3_ref, b3_ref, w4_ref, b4_ref, o_ref):
    """Fused 4-layer MLP for one row-block: 3x(Linear+ReLU) then Linear."""
    f32 = jnp.float32

    h = jnp.dot(x_ref[...], w1_ref[...], preferred_element_type=f32)
    h = jnp.maximum(h + b1_ref[...].astype(f32), 0.0)

    h = jnp.dot(h.astype(w2_ref.dtype), w2_ref[...], preferred_element_type=f32)
    h = jnp.maximum(h + b2_ref[...].astype(f32), 0.0)

    h = jnp.dot(h.astype(w3_ref.dtype), w3_ref[...], preferred_element_type=f32)
    h = jnp.maximum(h + b3_ref[...].astype(f32), 0.0)

    h = jnp.dot(h.astype(w4_ref.dtype), w4_ref[...], preferred_element_type=f32)
    o_ref[...] = (h + b4_ref[...].astype(f32)).astype(o_ref.dtype)


def gen_forward(noise, params, *, compute_dtype="auto"):
    """Forward pass of Gen via a single fused Pallas kernel.

    noise:  (M, z_dim)
    params: [(w1, b1), (w2, b2), (w3, b3), (w4, b4)], w of shape (in, out)
    compute_dtype: "auto" (default) picks bf16 weights/activations when the
                   weight set is large (> ~24 MiB f32, e.g. the real
                   hidden_dim=2000); pass None to force exact f32 or
                   jnp.bfloat16 to force the low-precision path.
    """
    (w1, b1), (w2, b2), (w3, b3), (w4, b4) = params
    M, k_in = noise.shape
    out_dim = w4.shape[1]
    out_dtype = noise.dtype

    # ---- Weight-stream dtype: the kernel is bound by streaming the weights
    # from HBM once per call; bf16 halves that stream AND the resident VMEM
    # footprint (mandatory for dim=2000 on v7x's 64 MiB VMEM). ----
    weight_bytes_f32 = 4 * sum(int(w.size) + int(b.size) for w, b in params)
    if compute_dtype == "auto":
        compute_dtype = (jnp.bfloat16
                         if weight_bytes_f32 > 24 * 1024 * 1024 else None)
    use_bf16 = compute_dtype is not None

    # ---- Lane-dense final layer: pad out_dim (2) -> multiple of 128 ----
    n_pad = _round_up(max(out_dim, 1), 128)
    w4p = jnp.zeros((w4.shape[0], n_pad), w4.dtype).at[:, :out_dim].set(w4)
    b4p = jnp.zeros((n_pad,), b4.dtype).at[:out_dim].set(b4)

    # ---- Row-block size ----
    # Small M: one padded block (16-row multiple for bf16 sublane packing).
    # Large M: 256-row tiles fill the 256-wide v6e/v7x MXU and halve the
    # per-grid-step overhead (still fine on v5e: two MXU passes per tile).
    sub = 16 if use_bf16 else 8
    if M <= 256:
        m_pad = _round_up(M, sub)
        tm = m_pad
    else:
        tm = 256
        m_pad = _round_up(M, tm)
    grid_m = m_pad // tm

    x = noise
    if m_pad != M:
        x = jnp.zeros((m_pad, k_in), noise.dtype).at[:M, :].set(noise)

    if use_bf16:
        x = x.astype(compute_dtype)
        cast = lambda a: a.astype(compute_dtype)
    else:
        cast = lambda a: a

    args = (
        x,
        cast(w1), b1.reshape(1, -1),
        cast(w2), b2.reshape(1, -1),
        cast(w3), b3.reshape(1, -1),
        cast(w4p), b4p.reshape(1, -1),
    )

    # Constant-index resident blocks: single-buffer them.  Their index_map
    # never changes, so a second pipeline buffer is pure VMEM waste.
    def _resident_block(a):
        return pl.BlockSpec(a.shape, lambda i: (0, 0),
                            pipeline_mode=pl.Buffered(1))

    in_specs = [pl.BlockSpec((tm, k_in), lambda i: (i, 0))]
    in_specs += [_resident_block(a) for a in args[1:]]

    # ---- Right-sized VMEM limit (resident weights + pipelined x/out blocks
    # + rough f32 activation temps + headroom), clamped to [32, 100] MiB so
    # we never demand v7x's entire 64 MiB physical VMEM. ----
    def _nbytes(a):
        return int(a.size) * jnp.dtype(a.dtype).itemsize

    resident_bytes = sum(_nbytes(a) for a in args[1:])              # Buffered(1)
    x_bytes = 2 * tm * k_in * jnp.dtype(x.dtype).itemsize           # 2-deep pipe
    out_bytes = 2 * tm * n_pad * jnp.dtype(out_dtype).itemsize      # 2-deep pipe
    max_width = max(w1.shape[1], w2.shape[1], w3.shape[1], n_pad)
    h_bytes = 2 * tm * max_width * 4                                # f32 temps
    need = resident_bytes + x_bytes + out_bytes + h_bytes
    vmem_limit = int(min(max(need + 16 * 1024 * 1024, 32 * 1024 * 1024),
                         100 * 1024 * 1024))

    # ---- Advisory cost estimate so XLA can overlap the call. ----
    layer_dims = [(k_in, w1.shape[1]), (w2.shape[0], w2.shape[1]),
                  (w3.shape[0], w3.shape[1]), (w4.shape[0], n_pad)]
    flops = 2 * m_pad * sum(a * b for a, b in layer_dims)
    bytes_accessed = (_nbytes(x) + resident_bytes
                      + m_pad * n_pad * jnp.dtype(out_dtype).itemsize)
    cost = pl.CostEstimate(flops=flops, transcendentals=0,
                           bytes_accessed=bytes_accessed)

    # Only shard across TensorCores once per-core compute outweighs the
    # duplicated weight DMA each core would issue (memory-bound small
    # batches lose from megacore splitting, especially on v7x).
    parallel = (grid_m >= 2) and (m_pad >= 1024)
    dim_sem = ("parallel",) if parallel else ("arbitrary",)

    out = pl.pallas_call(
        _gen_fused_kernel,
        out_shape=jax.ShapeDtypeStruct((m_pad, n_pad), out_dtype),
        grid_spec=pltpu.PrefetchScalarGridSpec(
            num_scalar_prefetch=0,
            grid=(grid_m,),
            in_specs=in_specs,
            out_specs=pl.BlockSpec((tm, n_pad), lambda i: (i, 0)),
        ),
        compiler_params=pltpu.CompilerParams(
            dimension_semantics=dim_sem,
            vmem_limit_bytes=vmem_limit,
        ),
        cost_estimate=cost,
    )(*args)

    return out[:M, :out_dim]


def gen_forward_ref(noise, params):
    h = noise
    for li, (w, b) in enumerate(params):
        h = h @ w + b
        if li < len(params) - 1:
            h = jnp.maximum(h, 0.0)
    return h


def init_gen_params(key, z_dim, hidden_dim, out_dim, dtype=jnp.float32):
    """Deterministic PyTorch-style (uniform +-1/sqrt(fan_in)) init."""
    dims = [(z_dim, hidden_dim), (hidden_dim, hidden_dim),
            (hidden_dim, hidden_dim), (hidden_dim, out_dim)]
    params = []
    for (fan_in, fan_out) in dims:
        key, kw, kb = jax.random.split(key, 3)
        bound = 1.0 / (fan_in ** 0.5)
        w = jax.random.uniform(kw, (fan_in, fan_out), dtype, -bound, bound)
        b = jax.random.uniform(kb, (fan_out,), dtype, -bound, bound)
        params.append((w, b))
    return params


if __name__ == "__main__":
    # Small shapes consistent with the module: z_dim=64 input, hidden width
    # scaled down from 2000 -> 256, output dim 2.
    batch = 8
    z_dim = 64
    hidden_dim = 256
    out_dim = 2

    key = jax.random.PRNGKey(0)
    key_noise, key_params = jax.random.split(key)

    noise = jax.random.normal(key_noise, (batch, z_dim), jnp.float32)
    params = init_gen_params(key_params, z_dim, hidden_dim, out_dim)

    out = jax.block_until_ready(gen_forward(noise, params))
    ref = jax.block_until_ready(gen_forward_ref(noise, params))

    assert out.shape == (batch, out_dim), out.shape
    assert jnp.allclose(out, ref, atol=1e-4, rtol=1e-4), "mismatch vs reference"

    print("KERNEL_OK")
</pallas_src>

<mosaic_0001>
module attributes {stable_mosaic.version = 11 : i64} {
  func.func @_gen_fused_kernel(%arg0: i32, %arg1: memref<8x64xf32, #tpu.memory_space<vmem>>, %arg2: memref<64x256xf32, #tpu.memory_space<vmem>>, %arg3: memref<1x256xf32, #tpu.memory_space<vmem>>, %arg4: memref<256x256xf32, #tpu.memory_space<vmem>>, %arg5: memref<1x256xf32, #tpu.memory_space<vmem>>, %arg6: memref<256x256xf32, #tpu.memory_space<vmem>>, %arg7: memref<1x256xf32, #tpu.memory_space<vmem>>, %arg8: memref<256x128xf32, #tpu.memory_space<vmem>>, %arg9: memref<1x128xf32, #tpu.memory_space<vmem>>, %arg10: memref<8x128xf32, #tpu.memory_space<vmem>>) attributes {dimension_semantics = [#tpu.dimension_semantics<arbitrary>], iteration_bounds = array<i64: 1>, scalar_prefetch = 0 : i64, scratch_operands = 0 : i64, tpu.core_type = #tpu.core_type<tc>, window_params = [{transform_indices = @transform_0, window_bounds = array<i64: 8, 64>}, {pipeline_mode = #tpu.pipeline_mode<synchronous>, transform_indices = @transform_1, window_bounds = array<i64: 64, 256>}, {pipeline_mode = #tpu.pipeline_mode<synchronous>, transform_indices = @transform_2, window_bounds = array<i64: 1, 256>}, {pipeline_mode = #tpu.pipeline_mode<synchronous>, transform_indices = @transform_3, window_bounds = array<i64: 256, 256>}, {pipeline_mode = #tpu.pipeline_mode<synchronous>, transform_indices = @transform_4, window_bounds = array<i64: 1, 256>}, {pipeline_mode = #tpu.pipeline_mode<synchronous>, transform_indices = @transform_5, window_bounds = array<i64: 256, 256>}, {pipeline_mode = #tpu.pipeline_mode<synchronous>, transform_indices = @transform_6, window_bounds = array<i64: 1, 256>}, {pipeline_mode = #tpu.pipeline_mode<synchronous>, transform_indices = @transform_7, window_bounds = array<i64: 256, 128>}, {pipeline_mode = #tpu.pipeline_mode<synchronous>, transform_indices = @transform_8, window_bounds = array<i64: 1, 128>}, {transform_indices = @transform_9, window_bounds = array<i64: 8, 128>}]} {
    %c0 = arith.constant 0 : index
    %c0_0 = arith.constant 0 : index
    %0 = vector.load %arg1[%c0, %c0_0] : memref<8x64xf32, #tpu.memory_space<vmem>>, vector<8x64xf32>
    %c0_1 = arith.constant 0 : index
    %c0_2 = arith.constant 0 : index
    %1 = vector.load %arg2[%c0_1, %c0_2] : memref<64x256xf32, #tpu.memory_space<vmem>>, vector<64x256xf32>
    %cst = arith.constant dense<0.000000e+00> : vector<8x256xf32>
    %2 = tpu.matmul %0, %1, %cst {dimension_numbers = #tpu.dot_dimension_numbers<[1], [0], [0], [1], [0, 0, 1, 1], [], []>} : vector<8x64xf32>, vector<64x256xf32>, vector<8x256xf32> -> vector<8x256xf32>
    %c0_3 = arith.constant 0 : index
    %c0_4 = arith.constant 0 : index
    %3 = vector.load %arg3[%c0_3, %c0_4] : memref<1x256xf32, #tpu.memory_space<vmem>>, vector<1x256xf32>
    %4 = vector.broadcast %3 : vector<1x256xf32> to vector<8x256xf32>
    %5 = arith.addf %2, %4 : vector<8x256xf32>
    %cst_5 = arith.constant 0.000000e+00 : f32
    %6 = vector.broadcast %cst_5 : f32 to vector<8x256xf32>
    %7 = arith.maximumf %5, %6 : vector<8x256xf32>
    %c0_6 = arith.constant 0 : index
    %c0_7 = arith.constant 0 : index
    %8 = vector.load %arg4[%c0_6, %c0_7] : memref<256x256xf32, #tpu.memory_space<vmem>>, vector<256x256xf32>
    %cst_8 = arith.constant dense<0.000000e+00> : vector<8x256xf32>
    %9 = tpu.matmul %7, %8, %cst_8 {dimension_numbers = #tpu.dot_dimension_numbers<[1], [0], [0], [1], [0, 0, 1, 1], [], []>} : vector<8x256xf32>, vector<256x256xf32>, vector<8x256xf32> -> vector<8x256xf32>
    %c0_9 = arith.constant 0 : index
    %c0_10 = arith.constant 0 : index
    %10 = vector.load %arg5[%c0_9, %c0_10] : memref<1x256xf32, #tpu.memory_space<vmem>>, vector<1x256xf32>
    %11 = vector.broadcast %10 : vector<1x256xf32> to vector<8x256xf32>
    %12 = arith.addf %9, %11 : vector<8x256xf32>
    %cst_11 = arith.constant 0.000000e+00 : f32
    %13 = vector.broadcast %cst_11 : f32 to vector<8x256xf32>
    %14 = arith.maximumf %12, %13 : vector<8x256xf32>
    %c0_12 = arith.constant 0 : index
    %c0_13 = arith.constant 0 : index
    %15 = vector.load %arg6[%c0_12, %c0_13] : memref<256x256xf32, #tpu.memory_space<vmem>>, vector<256x256xf32>
    %cst_14 = arith.constant dense<0.000000e+00> : vector<8x256xf32>
    %16 = tpu.matmul %14, %15, %cst_14 {dimension_numbers = #tpu.dot_dimension_numbers<[1], [0], [0], [1], [0, 0, 1, 1], [], []>} : vector<8x256xf32>, vector<256x256xf32>, vector<8x256xf32> -> vector<8x256xf32>
    %c0_15 = arith.constant 0 : index
    %c0_16 = arith.constant 0 : index
    %17 = vector.load %arg7[%c0_15, %c0_16] : memref<1x256xf32, #tpu.memory_space<vmem>>, vector<1x256xf32>
    %18 = vector.broadcast %17 : vector<1x256xf32> to vector<8x256xf32>
    %19 = arith.addf %16, %18 : vector<8x256xf32>
    %cst_17 = arith.constant 0.000000e+00 : f32
    %20 = vector.broadcast %cst_17 : f32 to vector<8x256xf32>
    %21 = arith.maximumf %19, %20 : vector<8x256xf32>
    %c0_18 = arith.constant 0 : index
    %c0_19 = arith.constant 0 : index
    %22 = vector.load %arg8[%c0_18, %c0_19] : memref<256x128xf32, #tpu.memory_space<vmem>>, vector<256x128xf32>
    %cst_20 = arith.constant dense<0.000000e+00> : vector<8x128xf32>
    %23 = tpu.matmul %21, %22, %cst_20 {dimension_numbers = #tpu.dot_dimension_numbers<[1], [0], [0], [1], [0, 0, 1, 1], [], []>} : vector<8x256xf32>, vector<256x128xf32>, vector<8x128xf32> -> vector<8x128xf32>
    %c0_21 = arith.constant 0 : index
    %c0_22 = arith.constant 0 : index
    %24 = vector.load %arg9[%c0_21, %c0_22] : memref<1x128xf32, #tpu.memory_space<vmem>>, vector<1x128xf32>
    %25 = vector.broadcast %24 : vector<1x128xf32> to vector<8x128xf32>
    %26 = arith.addf %23, %25 : vector<8x128xf32>
    %c0_23 = arith.constant 0 : index
    %c0_24 = arith.constant 0 : index
    %27 = vector.load %arg10[%c0_23, %c0_24] : memref<8x128xf32, #tpu.memory_space<vmem>>, vector<8x128xf32>
    tpu.vector_store %arg10[%c0_23, %c0_24], %26 {strides = array<i32>} : memref<8x128xf32, #tpu.memory_space<vmem>>, vector<8x128xf32>,
    return
  }
  func.func @transform_0(%arg0: i32) -> (i32, i32) {
    %c0_i32 = arith.constant 0 : i32
    %c0_i32_0 = arith.constant 0 : i32
    return %arg0, %c0_i32 : i32, i32
  }
  func.func @transform_1(%arg0: i32) -> (i32, i32) {
    %c0_i32 = arith.constant 0 : i32
    %c0_i32_0 = arith.constant 0 : i32
    %c0_i32_1 = arith.constant 0 : i32
    return %c0_i32, %c0_i32_0 : i32, i32
  }
  func.func @transform_2(%arg0: i32) -> (i32, i32) {
    %c0_i32 = arith.constant 0 : i32
    %c0_i32_0 = arith.constant 0 : i32
    %c0_i32_1 = arith.constant 0 : i32
    return %c0_i32, %c0_i32_0 : i32, i32
  }
  func.func @transform_3(%arg0: i32) -> (i32, i32) {
    %c0_i32 = arith.constant 0 : i32
    %c0_i32_0 = arith.constant 0 : i32
    %c0_i32_1 = arith.constant 0 : i32
    return %c0_i32, %c0_i32_0 : i32, i32
  }
  func.func @transform_4(%arg0: i32) -> (i32, i32) {
    %c0_i32 = arith.constant 0 : i32
    %c0_i32_0 = arith.constant 0 : i32
    %c0_i32_1 = arith.constant 0 : i32
    return %c0_i32, %c0_i32_0 : i32, i32
  }
  func.func @transform_5(%arg0: i32) -> (i32, i32) {
    %c0_i32 = arith.constant 0 : i32
    %c0_i32_0 = arith.constant 0 : i32
    %c0_i32_1 = arith.constant 0 : i32
    return %c0_i32, %c0_i32_0 : i32, i32
  }
  func.func @transform_6(%arg0: i32) -> (i32, i32) {
    %c0_i32 = arith.constant 0 : i32
    %c0_i32_0 = arith.constant 0 : i32
    %c0_i32_1 = arith.constant 0 : i32
    return %c0_i32, %c0_i32_0 : i32, i32
  }
  func.func @transform_7(%arg0: i32) -> (i32, i32) {
    %c0_i32 = arith.constant 0 : i32
    %c0_i32_0 = arith.constant 0 : i32
    %c0_i32_1 = arith.constant 0 : i32
    return %c0_i32, %c0_i32_0 : i32, i32
  }
  func.func @transform_8(%arg0: i32) -> (i32, i32) {
    %c0_i32 = arith.constant 0 : i32
    %c0_i32_0 = arith.constant 0 : i32
    %c0_i32_1 = arith.constant 0 : i32
    return %c0_i32, %c0_i32_0 : i32, i32
  }
  func.func @transform_9(%arg0: i32) -> (i32, i32) {
    %c0_i32 = arith.constant 0 : i32
    %c0_i32_0 = arith.constant 0 : i32
    return %arg0, %c0_i32 : i32, i32
  }
}

</mosaic_0001>

<bundles_post_ra>
// kernel: tpu_custom_call.1
= control target key start
LH: loop header
LB: loop body
LE: loop exit
PB: predicated region body
PF: predicated region fallthrough
CT: control target
= control target key end

     0   :  { %14 = vsyncpa [#allocation3], 0  ;;  %s1158_s0 = inlined_call_operand.hbm [shape: f32[8,64], index: 0, kind: input, shape index: {}]   ;;  %s1159_s1 = inlined_call_operand.hbm [shape: f32[64,256], index: 1, kind: input, shape index: {}]   ;;  %s1160_s2 = inlined_call_operand.vmem [shape: f32[1,256], index: 2, kind: input, shape index: {}]   ;;  %s1161_s3 = inlined_call_operand.hbm [shape: f32[256,256], index: 3, kind: input, shape index: {}]   ;;  %s1162_s4 = inlined_call_operand.vmem [shape: f32[1,256], index: 4, kind: input, shape index: {}]   ;;  %s1163_s5 = inlined_call_operand.hbm [shape: f32[256,256], index: 5, kind: input, shape index: {}]   ;;  %s1164_s6 = inlined_call_operand.vmem [shape: f32[1,256], index: 6, kind: input, shape index: {}]   ;;  %s1165_s7 = inlined_call_operand.hbm [shape: f32[256,128], index: 7, kind: input, shape index: {}]   ;;  %s1166_s8 = inlined_call_operand.vmem [shape: f32[1,128], index: 8, kind: input, shape index: {}]   ;;  %s1167_s9 = inlined_call_operand.hbm [shape: f32[8,128], index: 9, kind: output, shape index: {}]  }
   0x1   :  { %15 = vsyncpa [#allocation6], 0 }
   0x2   :  { %16 = vsyncpa [#allocation9], 0 }
   0x3   :  { %17 = vsyncpa [#allocation4], 0  ;;  %s994_s30 = smov [#allocation5]   ;;  %s854_s13 = scalar_lea.hbm %s1159_s1, 2048 }
   0x4   :  { %s33_s10 = sshll.u32 %s994_s30, 4  ;;  %p855_p0 = scmp.ne.s32.totalorder %s1159_s1, %s854_s13  ;;  %s34_s10 = int_to_ptr.vmem [resolvable:$true] %s33_s10 }
   0x5   :  { %p858_p1 = scmp.lt.u32.totalorder %s854_s13, %s1159_s1 }
   0x7   :  { %p860_p2 = pnand %p858_p1, %p855_p0 }
   0x9   :  { %863 = shalt.err (!%p860_p2)
}
   0xa   :  { %s864_s18 = scalar_lea.vmem %s34_s10, 2048  ;;  %p869_p4 = scmp.lt.s32.totalorder %s34_s10, %s34_s10 }
   0xb   :  { %p865_p3 = scmp.ne.s32.totalorder %s34_s10, %s864_s18  ;;  %p870_p5 = scmp.lt.s32.totalorder %s864_s18, %s864_s18 }
   0xd   :  { %p871_p6 = por %p870_p5, %p869_p4 }
   0xf   :  { %p872_p7 = pnand %p871_p6, %p865_p3 }
  0x11   :  { %875 = shalt.err (!%p872_p7)
}
  0x12   :  { %s995_s19 = smov 256   ;;  %s996_s20 = smov 16  }
  0x13   :  { %39 = dma.hbm_to_vmem [thread:$0]  %s1159_s1, 2048, %s34_s10, [#allocation6], %s995_s19, %s995_s19, %s996_s20  }
  0x14   :  { %s997_s23 = smov [#allocation8]   ;;  %s998_s25 = smov [#allocation2]  }
  0x15   :  { %s61_s24 = sshll.u32 %s997_s23, 4  ;;  %s24_s26 = sshll.u32 %s998_s25, 4  ;;  %s62_s24 = int_to_ptr.vmem [resolvable:$true] %s61_s24  ;;  %s25_s26 = int_to_ptr.vmem [resolvable:$true] %s24_s26 }
  0x16   :  { %s876_s29 = scalar_lea.hbm %s1163_s5, 8192 }
  0x17   :  { %p877_p8 = scmp.ne.s32.totalorder %s1163_s5, %s876_s29  ;;  %p880_p9 = scmp.lt.u32.totalorder %s876_s29, %s1163_s5 }
  0x19   :  { %p882_p10 = pnand %p880_p9, %p877_p8 }
  0x1b   :  { %885 = shalt.err (!%p882_p10)
}
  0x1c   :  { %s886_s1 = scalar_lea.vmem %s62_s24, 8192  ;;  %p891_p12 = scmp.lt.s32.totalorder %s62_s24, %s62_s24 }
  0x1d   :  { %p887_p11 = scmp.ne.s32.totalorder %s62_s24, %s886_s1  ;;  %p892_p13 = scmp.lt.s32.totalorder %s886_s1, %s886_s1 }
  0x1f   :  { %p893_p0 = por %p892_p13, %p891_p12 }
  0x21   :  { %p894_p1 = pnand %p893_p0, %p887_p11 }
  0x23   :  { %897 = shalt.err (!%p894_p1)
}
  0x24   :  { %67 = dma.hbm_to_vmem [thread:$0]  %s1163_s5, 8192, %s62_s24, [#allocation9], %s995_s19, %s995_s19, %s996_s20  }
  0x25   :  { %s898_s17 = scalar_lea.hbm %s1158_s0, 128 }
  0x26   :  { %p899_p2 = scmp.ne.s32.totalorder %s1158_s0, %s898_s17  ;;  %p902_p3 = scmp.lt.u32.totalorder %s898_s17, %s1158_s0 }
  0x28   :  { %p904_p4 = pnand %p902_p3, %p899_p2 }
  0x2a   :  { %907 = shalt.err (!%p904_p4)
}
  0x2b   :  { %s908_s25 = scalar_lea.vmem %s25_s26, 128  ;;  %p913_p6 = scmp.lt.s32.totalorder %s25_s26, %s25_s26 }
  0x2c   :  { %p909_p5 = scmp.ne.s32.totalorder %s25_s26, %s908_s25  ;;  %p914_p7 = scmp.lt.s32.totalorder %s908_s25, %s908_s25 }
  0x2e   :  { %p915_p8 = por %p914_p7, %p913_p6 }
  0x30   :  { %p916_p9 = pnand %p915_p8, %p909_p5 }
  0x32   :  { %919 = shalt.err (!%p916_p9)
}
  0x33   :  { %27 = dma.hbm_to_vmem [thread:$0]  %s1158_s0, 128, %s25_s26, [#allocation3]  }
  0x34   :  { %s999_s27 = smov [#allocation7]   ;;  %s1000_s29 = smov [#allocation10]  }
  0x35   :  { %s47_s28 = sshll.u32 %s999_s27, 4  ;;  %s75_s30 = sshll.u32 %s1000_s29, 4  ;;  %s48_s28 = int_to_ptr.vmem [resolvable:$true] %s47_s28  ;;  %s76_s30 = int_to_ptr.vmem [resolvable:$true] %s75_s30 }
  0x36   :  { %s920_s13 = scalar_lea.hbm %s1161_s3, 8192 }
  0x37   :  { %p921_p10 = scmp.ne.s32.totalorder %s1161_s3, %s920_s13  ;;  %p924_p11 = scmp.lt.u32.totalorder %s920_s13, %s1161_s3 }
  0x39   :  { %p926_p12 = pnand %p924_p11, %p921_p10 }
  0x3b   :  { %929 = shalt.err (!%p926_p12)
}
  0x3c   :  { %s930_s0 = scalar_lea.vmem %s48_s28, 8192  ;;  %p935_p0 = scmp.lt.s32.totalorder %s48_s28, %s48_s28 }
  0x3d   :  { %p931_p13 = scmp.ne.s32.totalorder %s48_s28, %s930_s0  ;;  %p936_p1 = scmp.lt.s32.totalorder %s930_s0, %s930_s0 }
  0x3f   :  { %p937_p2 = por %p936_p1, %p935_p0 }
  0x41   :  { %p938_p3 = pnand %p937_p2, %p931_p13 }
  0x43   :  { %941 = shalt.err (!%p938_p3)
}
  0x44   :  { %53 = dma.hbm_to_vmem [thread:$0]  %s1161_s3, 8192, %s48_s28, [#allocation6], %s995_s19, %s995_s19, %s996_s20  }
  0x45   :  { %s942_s21 = scalar_lea.hbm %s1165_s7, 4096 }
  0x46   :  { %p943_p4 = scmp.ne.s32.totalorder %s1165_s7, %s942_s21  ;;  %p946_p5 = scmp.lt.u32.totalorder %s942_s21, %s1165_s7 }
  0x48   :  { %p948_p6 = pnand %p946_p5, %p943_p4 }
  0x4a   :  { %951 = shalt.err (!%p948_p6)
}
  0x4b   :  { %s952_s24 = scalar_lea.vmem %s76_s30, 4096  ;;  %p957_p8 = scmp.lt.s32.totalorder %s76_s30, %s76_s30 }
  0x4c   :  { %p953_p7 = scmp.ne.s32.totalorder %s76_s30, %s952_s24  ;;  %p958_p9 = scmp.lt.s32.totalorder %s952_s24, %s952_s24 }
  0x4e   :  { %p959_p10 = por %p958_p9, %p957_p8 }
  0x50   :  { %p960_p11 = pnand %p959_p10, %p953_p7 }
  0x52   :  { %963 = shalt.err (!%p960_p11)
}
  0x53   :  { %s1001_s3 = smov 128   ;;  %s1002_s19 = smov 8  }
  0x54   :  { %81 = dma.hbm_to_vmem [thread:$0]  %s1165_s7, 4096, %s76_s30, [#allocation9], %s1001_s3, %s1001_s3, %s1002_s19  }
  0x55   :  { %986 = dma.done.wait [#allocation3], 128  }
  0x56   :  { %987 = vsyncadd [#allocation3], 4294967168 }
  0x57   :  { %988 = dma.done.wait [#allocation6], 10240  }
  0x58   :  { %989 = vsyncadd [#allocation6], 4294957056 }
  0x59   :  { %990 = dma.done.wait [#allocation9], 12288  }
  0x5a   :  { %991 = vsyncadd [#allocation9], 4294955008  ;;  %v1003_v0 = vmov 0.0   ;;  %v101_v1 = vld [vmem:[#allocation5 + $0x8] sm:$0xff]  ;;  %v103_v2 = vld [vmem:[#allocation5 + $0x18] sm:$0xff]  ;;  %vm128_vm0 = vcmask 523264  }
  0x5b   :  { %196 = vmatprep.mubr.f32.mxu0 %v1003_v0  ;;  %v100_v3 = vld [vmem:[#allocation5] sm:$0xff]  ;;  %v667_v4 = vpack.c.bf16 %v103_v2, %v101_v1  ;;  %v102_v5 = vld [vmem:[#allocation5 + $0x10] sm:$0xff]  ;;  %v105_v6 = vld [vmem:[#allocation5 + $0x28] sm:$0xff]  ;;  %s1004_s13 = smov [#allocation11]  }
  0x5c   :  { %v107_v7 = vld [vmem:[#allocation5 + $0x38] sm:$0xff]  ;;  %v669_v8 = vpack.c.bf16 %v102_v5, %v100_v3  ;;  %v104_v10 = vld [vmem:[#allocation5 + $0x20] sm:$0xff]  ;;  %v106_v11 = vld [vmem:[#allocation5 + $0x30] sm:$0xff] }
  0x5d   :  { %v671_v9 = vpack.c.bf16 %v107_v7, %v105_v6  ;;  %v109_v12 = vld [vmem:[#allocation5 + $0x48] sm:$0xff]  ;;  %668 = vmatprep.subr.bf16.mxu0 %v667_v4  ;;  %v111_v13 = vld [vmem:[#allocation5 + $0x58] sm:$0xff]  ;;  %v673_v14 = vpack.c.bf16 %v106_v11, %v104_v10  ;;  %v108_v15 = vld [vmem:[#allocation5 + $0x40] sm:$0xff] }
  0x5e   :  { %670 = vmatpush1.bf16.msra.mxu0 %v669_v8  ;;  %v110_v16 = vld [vmem:[#allocation5 + $0x50] sm:$0xff]  ;;  %v675_v17 = vpack.c.bf16 %v111_v13, %v109_v12  ;;  %v113_v18 = vld [vmem:[#allocation5 + $0x68] sm:$0xff]  ;;  %v115_v19 = vld [vmem:[#allocation5 + $0x78] sm:$0xff] }
  0x5f   :  { %672 = vmatprep.subr.bf16.mxu0 %v671_v9  ;;  %v206_v20 = vld [vmem:[#allocation7 + $0x8] sm:$0xff]  ;;  %v208_v21 = vld [vmem:[#allocation7 + $0x18] sm:$0xff]  ;;  %v205_v22 = vld [vmem:[#allocation7] sm:$0xff]  ;;  %v677_v29 = vpack.c.bf16 %v110_v16, %v108_v15  ;;  %v679_v34 = vpack.c.bf16 %v115_v19, %v113_v18 }
  0x60   :  { %v207_v23 = vld [vmem:[#allocation7 + $0x10] sm:$0xff]  ;;  %v683_v24 = vpack.c.bf16 %v208_v21, %v206_v20  ;;  %v210_v26 = vld [vmem:[#allocation7 + $0x28] sm:$0xff]  ;;  %v212_v27 = vld [vmem:[#allocation7 + $0x38] sm:$0xff] }
  0x61   :  { %v685_v25 = vpack.c.bf16 %v207_v23, %v205_v22  ;;  %v209_v28 = vld [vmem:[#allocation7 + $0x20] sm:$0xff]  ;;  %v687_v30 = vpack.c.bf16 %v212_v27, %v210_v26  ;;  %v211_v31 = vld [vmem:[#allocation7 + $0x30] sm:$0xff]  ;;  %v214_v32 = vld [vmem:[#allocation7 + $0x48] sm:$0xff] }
  0x62   :  { %674 = vmatpush1.bf16.msra.mxu0 %v673_v14  ;;  %v216_v33 = vld [vmem:[#allocation7 + $0x58] sm:$0xff]  ;;  %v112_v35 = vld [vmem:[#allocation5 + $0x60] sm:$0xff]  ;;  %v114_v36 = vld [vmem:[#allocation5 + $0x70] sm:$0xff]  ;;  %684 = vmatprep.subr.bf16.mxu1 %v683_v24  ;;  %v689_v37 = vpack.c.bf16 %v211_v31, %v209_v28 }
  0x63   :  { %676 = vmatprep.subr.bf16.mxu0 %v675_v17  ;;  %686 = vmatpush1.bf16.msra.mxu1 %v685_v25  ;;  %v691_v38 = vpack.c.bf16 %v216_v33, %v214_v32  ;;  %v213_v39 = vld [vmem:[#allocation7 + $0x40] sm:$0xff]  ;;  %v215_v40 = vld [vmem:[#allocation7 + $0x50] sm:$0xff]  ;;  %v681_v41 = vpack.c.bf16 %v114_v36, %v112_v35  ;;  %v218_v42 = vld [vmem:[#allocation7 + $0x68] sm:$0xff] }
  0x64   :  { %688 = vmatprep.subr.bf16.mxu1 %v687_v30  ;;  %v220_v43 = vld [vmem:[#allocation7 + $0x78] sm:$0xff]  ;;  %v693_v44 = vpack.c.bf16 %v215_v40, %v213_v39  ;;  %v217_v46 = vld [vmem:[#allocation7 + $0x60] sm:$0xff]  ;;  %v219_v47 = vld [vmem:[#allocation7 + $0x70] sm:$0xff] }
  0x65   :  { %v695_v45 = vpack.c.bf16 %v220_v43, %v218_v42  ;;  %v99_v48 = vld [vmem:[#allocation2] sm:$0xff]  ;;  %v222_v49 = vld [vmem:[#allocation7 + $0x88] sm:$0xff]  ;;  %v697_v51 = vpack.c.bf16 %v219_v47, %v217_v46  ;;  %v221_v53 = vld [vmem:[#allocation7 + $0x80] sm:$0xff] }
  0x66   :  { %678 = vmatpush1.bf16.msra.mxu0 %v677_v29  ;;  %v224_v50 = vld [vmem:[#allocation7 + $0x98] sm:$0xff]  ;;  %v223_v54 = vld [vmem:[#allocation7 + $0x90] sm:$0xff]  ;;  %v226_v55 = vld [vmem:[#allocation7 + $0xa8] sm:$0xff] }
  0x67   :  { %680 = vmatprep.subr.bf16.mxu0 %v679_v34  ;;  %690 = vmatpush1.bf16.msra.mxu1 %v689_v37  ;;  %v699_v52 = vpack.c.bf16 %v224_v50, %v222_v49  ;;  %v228_v56 = vld [vmem:[#allocation7 + $0xb8] sm:$0xff]  ;;  %v701_v57 = vpack.c.bf16 %v223_v54, %v221_v53  ;;  %v225_v59 = vld [vmem:[#allocation7 + $0xa0] sm:$0xff]  ;;  %v227_v60 = vld [vmem:[#allocation7 + $0xb0] sm:$0xff] }
  0x68   :  { %692 = vmatprep.subr.bf16.mxu1 %v691_v38  ;;  %v703_v58 = vpack.c.bf16 %v228_v56, %v226_v55  ;;  %v230_v61 = vld [vmem:[#allocation7 + $0xc8] sm:$0xff]  ;;  %v232_v62 = vld [vmem:[#allocation7 + $0xd8] sm:$0xff]  ;;  %v705_v63 = vpack.c.bf16 %v227_v60, %v225_v59  ;;  %v229_v1 = vld [vmem:[#allocation7 + $0xc0] sm:$0xff] }
  0x69   :  { %v707_v0 = vpack.c.bf16 %v232_v62, %v230_v61  ;;  %v231_v2 = vld [vmem:[#allocation7 + $0xd0] sm:$0xff]  ;;  %v234_v3 = vld [vmem:[#allocation7 + $0xe8] sm:$0xff]  ;;  %v236_v4 = vld [vmem:[#allocation7 + $0xf8] sm:$0xff] }
  0x6a   :  { %682 = vmatpush1.bf16.msra.mxu0 %v681_v41  ;;  %v709_v5 = vpack.c.bf16 %v231_v2, %v229_v1  ;;  %v711_v6 = vpack.c.bf16 %v236_v4, %v234_v3  ;;  %v233_v7 = vld [vmem:[#allocation7 + $0xe0] sm:$0xff]  ;;  %v235_v8 = vld [vmem:[#allocation7 + $0xf0] sm:$0xff]  ;;  %v238_v9 = vld [vmem:[#allocation7 + $0x108] sm:$0xff] }
  0x6b   :  { %694 = vmatpush1.bf16.msra.mxu1 %v693_v44  ;;  %v240_v10 = vld [vmem:[#allocation7 + $0x118] sm:$0xff]  ;;  %v713_v11 = vpack.c.bf16 %v235_v8, %v233_v7  ;;  %v237_v13 = vld [vmem:[#allocation7 + $0x100] sm:$0xff]  ;;  %v239_v14 = vld [vmem:[#allocation7 + $0x110] sm:$0xff] }
  0x6c   :  { %696 = vmatprep.subr.bf16.mxu1 %v695_v45  ;;  %v715_v12 = vpack.c.bf16 %v240_v10, %v238_v9  ;;  %v242_v15 = vld [vmem:[#allocation7 + $0x128] sm:$0xff]  ;;  %v244_v16 = vld [vmem:[#allocation7 + $0x138] sm:$0xff]  ;;  %v717_v17 = vpack.c.bf16 %v239_v14, %v237_v13  ;;  %v241_v19 = vld [vmem:[#allocation7 + $0x120] sm:$0xff] }
  0x6d   :  { %630 = vmatmul.mubr.msk.f32.vlgmr.msra.gmra.mrb[0].mxu0 %vm128_vm0, %v99_v48  ;;  %v719_v18 = vpack.c.bf16 %v244_v16, %v242_v15  ;;  %v243_v20 = vld [vmem:[#allocation7 + $0x130] sm:$0xff]  ;;  %v246_v21 = vld [vmem:[#allocation7 + $0x148] sm:$0xff]  ;;  %v248_v22 = vld [vmem:[#allocation7 + $0x158] sm:$0xff] }
  0x6e   :  { %v721_v23 = vpack.c.bf16 %v243_v20, %v241_v19  ;;  %v723_v24 = vpack.c.bf16 %v248_v22, %v246_v21  ;;  %v245_v25 = vld [vmem:[#allocation7 + $0x140] sm:$0xff]  ;;  %v247_v26 = vld [vmem:[#allocation7 + $0x150] sm:$0xff]  ;;  %v250_v27 = vld [vmem:[#allocation7 + $0x168] sm:$0xff] }
  0x6f   :  { %698 = vmatpush1.bf16.msra.mxu1 %v697_v51  ;;  %v252_v28 = vld [vmem:[#allocation7 + $0x178] sm:$0xff]  ;;  %v725_v29 = vpack.c.bf16 %v247_v26, %v245_v25  ;;  %v249_v31 = vld [vmem:[#allocation7 + $0x160] sm:$0xff]  ;;  %v251_v32 = vld [vmem:[#allocation7 + $0x170] sm:$0xff] }
  0x70   :  { %700 = vmatprep.subr.bf16.mxu1 %v699_v52  ;;  %v727_v30 = vpack.c.bf16 %v252_v28, %v250_v27  ;;  %v254_v33 = vld [vmem:[#allocation7 + $0x188] sm:$0xff]  ;;  %v256_v34 = vld [vmem:[#allocation7 + $0x198] sm:$0xff]  ;;  %v729_v35 = vpack.c.bf16 %v251_v32, %v249_v31  ;;  %v253_v37 = vld [vmem:[#allocation7 + $0x180] sm:$0xff] }
  0x71   :  { %v731_v36 = vpack.c.bf16 %v256_v34, %v254_v33  ;;  %v255_v38 = vld [vmem:[#allocation7 + $0x190] sm:$0xff]  ;;  %v258_v39 = vld [vmem:[#allocation7 + $0x1a8] sm:$0xff]  ;;  %v260_v40 = vld [vmem:[#allocation7 + $0x1b8] sm:$0xff] }
  0x72   :  { %v733_v41 = vpack.c.bf16 %v255_v38, %v253_v37  ;;  %v735_v42 = vpack.c.bf16 %v260_v40, %v258_v39  ;;  %v257_v43 = vld [vmem:[#allocation7 + $0x1a0] sm:$0xff]  ;;  %v259_v44 = vld [vmem:[#allocation7 + $0x1b0] sm:$0xff]  ;;  %v262_v45 = vld [vmem:[#allocation7 + $0x1c8] sm:$0xff] }
  0x73   :  { %702 = vmatpush1.bf16.msra.mxu1 %v701_v57  ;;  %v264_v46 = vld [vmem:[#allocation7 + $0x1d8] sm:$0xff]  ;;  %v737_v47 = vpack.c.bf16 %v259_v44, %v257_v43  ;;  %v261_v49 = vld [vmem:[#allocation7 + $0x1c0] sm:$0xff]  ;;  %v263_v50 = vld [vmem:[#allocation7 + $0x1d0] sm:$0xff] }
  0x74   :  { %704 = vmatprep.subr.bf16.mxu1 %v703_v58  ;;  %v739_v48 = vpack.c.bf16 %v264_v46, %v262_v45  ;;  %v741_v51 = vpack.c.bf16 %v263_v50, %v261_v49  ;;  %v266_v52 = vld [vmem:[#allocation7 + $0x1e8] sm:$0xff]  ;;  %v268_v53 = vld [vmem:[#allocation7 + $0x1f8] sm:$0xff]  ;;  %v265_v55 = vld [vmem:[#allocation7 + $0x1e0] sm:$0xff] }
  0x75   :  { %v743_v54 = vpack.c.bf16 %v268_v53, %v266_v52  ;;  %v267_v56 = vld [vmem:[#allocation7 + $0x1f0] sm:$0xff]  ;;  %v355_v58 = vld [vmem:[#allocation8 + $0x8] sm:$0xff]  ;;  %v357_v59 = vld [vmem:[#allocation8 + $0x18] sm:$0xff] }
  0x76   :  { %v745_v57 = vpack.c.bf16 %v267_v56, %v265_v55  ;;  %v354_v60 = vld [vmem:[#allocation8] sm:$0xff]  ;;  %v747_v61 = vpack.c.bf16 %v357_v59, %v355_v58  ;;  %v356_v62 = vld [vmem:[#allocation8 + $0x10] sm:$0xff]  ;;  %v395_v53 = vld [vmem:[#allocation8 + $0x148] sm:$0xff] }
  0x77   :  { %706 = vmatpush1.bf16.msra.mxu1 %v705_v63  ;;  %v359_v63 = vld [vmem:[#allocation8 + $0x28] sm:$0xff]  ;;  %v749_v1 = vpack.c.bf16 %v356_v62, %v354_v60  ;;  %v358_v3 = vld [vmem:[#allocation8 + $0x20] sm:$0xff]  ;;  %v360_v4 = vld [vmem:[#allocation8 + $0x30] sm:$0xff] }
  0x78   :  { %708 = vmatprep.subr.bf16.mxu1 %v707_v0  ;;  %v361_v0 = vld [vmem:[#allocation8 + $0x38] sm:$0xff]  ;;  %748 = vmatprep.subr.bf16.mxu0 %v747_v61  ;;  %v753_v7 = vpack.c.bf16 %v360_v4, %v358_v3  ;;  %v362_v9 = vld [vmem:[#allocation8 + $0x40] sm:$0xff]  ;;  %v364_v10 = vld [vmem:[#allocation8 + $0x50] sm:$0xff] }
  0x79   :  { %v751_v2 = vpack.c.bf16 %v361_v0, %v359_v63  ;;  %750 = vmatpush1.bf16.msra.mxu0 %v749_v1  ;;  %v757_v13 = vpack.c.bf16 %v364_v10, %v362_v9  ;;  %v366_v15 = vld [vmem:[#allocation8 + $0x60] sm:$0xff]  ;;  %v368_v16 = vld [vmem:[#allocation8 + $0x70] sm:$0xff]  ;;  %v399_v59 = vld [vmem:[#allocation8 + $0x168] sm:$0xff] }
  0x7a   :  { %v761_v19 = vpack.c.bf16 %v368_v16, %v366_v15  ;;  %v370_v21 = vld [vmem:[#allocation8 + $0x80] sm:$0xff]  ;;  %v372_v22 = vld [vmem:[#allocation8 + $0x90] sm:$0xff]  ;;  %v401_v60 = vld [vmem:[#allocation8 + $0x178] sm:$0xff] }
  0x7b   :  { %710 = vmatpush1.bf16.msra.mxu1 %v709_v5  ;;  %v363_v5 = vld [vmem:[#allocation8 + $0x48] sm:$0xff]  ;;  %752 = vmatprep.subr.bf16.mxu0 %v751_v2  ;;  %v765_v25 = vpack.c.bf16 %v372_v22, %v370_v21  ;;  %v374_v27 = vld [vmem:[#allocation8 + $0xa0] sm:$0xff]  ;;  %v376_v28 = vld [vmem:[#allocation8 + $0xb0] sm:$0xff]  ;;  %v791_v62 = vpack.c.bf16 %v401_v60, %v399_v59 }
  0x7c   :  { %712 = vmatprep.subr.bf16.mxu1 %v711_v6  ;;  %v365_v6 = vld [vmem:[#allocation8 + $0x58] sm:$0xff]  ;;  %v769_v31 = vpack.c.bf16 %v376_v28, %v374_v27  ;;  %v378_v33 = vld [vmem:[#allocation8 + $0xc0] sm:$0xff]  ;;  %v380_v34 = vld [vmem:[#allocation8 + $0xd0] sm:$0xff] }
  0x7d   :  { %v755_v8 = vpack.c.bf16 %v365_v6, %v363_v5  ;;  %754 = vmatpush1.bf16.msra.mxu0 %v753_v7  ;;  %v773_v37 = vpack.c.bf16 %v380_v34, %v378_v33  ;;  %v382_v39 = vld [vmem:[#allocation8 + $0xe0] sm:$0xff]  ;;  %v384_v40 = vld [vmem:[#allocation8 + $0xf0] sm:$0xff]  ;;  %v403_v1 = vld [vmem:[#allocation8 + $0x188] sm:$0xff] }
  0x7e   :  { %v777_v43 = vpack.c.bf16 %v384_v40, %v382_v39  ;;  %v386_v45 = vld [vmem:[#allocation8 + $0x100] sm:$0xff]  ;;  %v388_v46 = vld [vmem:[#allocation8 + $0x110] sm:$0xff]  ;;  %v405_v2 = vld [vmem:[#allocation8 + $0x198] sm:$0xff] }
  0x7f   :  { %714 = vmatpush1.bf16.msra.mxu1 %v713_v11  ;;  %v367_v11 = vld [vmem:[#allocation8 + $0x68] sm:$0xff]  ;;  %756 = vmatprep.subr.bf16.mxu0 %v755_v8  ;;  %v781_v49 = vpack.c.bf16 %v388_v46, %v386_v45  ;;  %v392_v52 = vld [vmem:[#allocation8 + $0x130] sm:$0xff]  ;;  %v398_v63 = vld [vmem:[#allocation8 + $0x160] sm:$0xff]  ;;  %v795_v4 = vpack.c.bf16 %v405_v2, %v403_v1 }
  0x80   :  { %716 = vmatprep.subr.bf16.mxu1 %v715_v12  ;;  %v369_v12 = vld [vmem:[#allocation8 + $0x78] sm:$0xff]  ;;  %v396_v58 = vld [vmem:[#allocation8 + $0x150] sm:$0xff]  ;;  %v402_v5 = vld [vmem:[#allocation8 + $0x180] sm:$0xff] }
  0x81   :  { %v759_v14 = vpack.c.bf16 %v369_v12, %v367_v11  ;;  %758 = vmatpush1.bf16.msra.mxu0 %v757_v13  ;;  %v400_v0 = vld [vmem:[#allocation8 + $0x170] sm:$0xff]  ;;  %v407_v7 = vld [vmem:[#allocation8 + $0x1a8] sm:$0xff]  ;;  %v409_v8 = vld [vmem:[#allocation8 + $0x1b8] sm:$0xff] }
  0x82   :  { %v793_v3 = vpack.c.bf16 %v400_v0, %v398_v63  ;;  %v404_v6 = vld [vmem:[#allocation8 + $0x190] sm:$0xff]  ;;  %v799_v10 = vpack.c.bf16 %v409_v8, %v407_v7  ;;  %v406_v11 = vld [vmem:[#allocation8 + $0x1a0] sm:$0xff]  ;;  %v411_v13 = vld [vmem:[#allocation8 + $0x1c8] sm:$0xff] }
  0x83   :  { %718 = vmatpush1.bf16.msra.mxu1 %v717_v17  ;;  %v371_v17 = vld [vmem:[#allocation8 + $0x88] sm:$0xff]  ;;  %760 = vmatprep.subr.bf16.mxu0 %v759_v14  ;;  %v797_v9 = vpack.c.bf16 %v404_v6, %v402_v5  ;;  %v408_v12 = vld [vmem:[#allocation8 + $0x1b0] sm:$0xff]  ;;  %v413_v14 = vld [vmem:[#allocation8 + $0x1d8] sm:$0xff] }
  0x84   :  { %720 = vmatprep.subr.bf16.mxu1 %v719_v18  ;;  %v373_v18 = vld [vmem:[#allocation8 + $0x98] sm:$0xff]  ;;  %v801_v15 = vpack.c.bf16 %v408_v12, %v406_v11  ;;  %v803_v16 = vpack.c.bf16 %v413_v14, %v411_v13  ;;  %v415_v33 = vld [vmem:[#allocation8 + $0x1e8] sm:$0xff]  ;;  %v519_v39 = vld [vmem:[#allocation10 + $0x80] sm:$0xff] }
  0x85   :  { %v763_v20 = vpack.c.bf16 %v373_v18, %v371_v17  ;;  %762 = vmatpush1.bf16.msra.mxu0 %v761_v19  ;;  %v118_v17 = vlaneseq  ;;  %v417_v34 = vld [vmem:[#allocation8 + $0x1f8] sm:$0xff]  ;;  %v520_v40 = vld [vmem:[#allocation10 + $0x88] sm:$0xff]  ;;  %v509_v60 = vld [vmem:[#allocation10 + $0x30] sm:$0xff] }
  0x86   :  { %v522_v45 = vld [vmem:[#allocation10 + $0x98] sm:$0xff]  ;;  %v528_v63 = vld [vmem:[#allocation10 + $0xc8] sm:$0xff]  ;;  %v511_v2 = vld [vmem:[#allocation10 + $0x40] sm:$0xff] }
  0x87   :  { %722 = vmatpush1.bf16.msra.mxu1 %v721_v23  ;;  %v375_v23 = vld [vmem:[#allocation8 + $0xa8] sm:$0xff]  ;;  %764 = vmatprep.subr.bf16.mxu0 %v763_v20  ;;  %v119_v18 = vshrl.u32 %v118_v17, 7  ;;  %v116_v20 = vld [vmem:[%s1160_s2] sm:$0x3]  ;;  %v513_v8 = vld [vmem:[#allocation10 + $0x50] sm:$0xff] }
  0x88   :  { %724 = vmatprep.subr.bf16.mxu1 %v723_v24  ;;  %v377_v24 = vld [vmem:[#allocation8 + $0xb8] sm:$0xff]  ;;  %v532_v11 = vld [vmem:[#allocation10 + $0xe8] sm:$0xff] }
  0x89   :  { %v767_v26 = vpack.c.bf16 %v377_v24, %v375_v23  ;;  %766 = vmatpush1.bf16.msra.mxu0 %v765_v25  ;;  %v1124_v19 = vsub.s32 0, %v119_v18  ;;  %v1129_v21 = vsub.s32 1, %v119_v18  ;;  %v530_v5 = vld [vmem:[#allocation10 + $0xd8] sm:$0xff] }
  0x8a   :  { %v269_v14 = vld [vmem:[%s1162_s4] sm:$0x3] }
  0x8b   :  { %726 = vmatpush1.bf16.msra.mxu1 %v725_v29  ;;  %v379_v29 = vld [vmem:[#allocation8 + $0xc8] sm:$0xff]  ;;  %768 = vmatprep.subr.bf16.mxu0 %v767_v26  ;;  %v121_v22 = vrot.slane %v116_v20, %v1124_v19  ;;  %v125_v23 = vrot.slane %v116_v20, %v1129_v21 }
  0x8c   :  { %728 = vmatprep.subr.bf16.mxu1 %v727_v30  ;;  %v381_v30 = vld [vmem:[#allocation8 + $0xd8] sm:$0xff] }
  0x8d   :  { %v771_v32 = vpack.c.bf16 %v381_v30, %v379_v29  ;;  %770 = vmatpush1.bf16.msra.mxu0 %v769_v31  ;;  %v410_v30 = vld [vmem:[#allocation8 + $0x1c0] sm:$0xff]  ;;  %v412_v31 = vld [vmem:[#allocation8 + $0x1d0] sm:$0xff] }
  0x8f   :  { %730 = vmatpush1.bf16.msra.mxu1 %v729_v35  ;;  %v383_v35 = vld [vmem:[#allocation8 + $0xe8] sm:$0xff]  ;;  %772 = vmatprep.subr.bf16.mxu0 %v771_v32  ;;  %v805_v32 = vpack.c.bf16 %v412_v31, %v410_v30  ;;  %v517_v31 = vld [vmem:[#allocation10 + $0x70] sm:$0xff] }
  0x90   :  { %732 = vmatprep.subr.bf16.mxu1 %v731_v36  ;;  %v385_v36 = vld [vmem:[#allocation8 + $0xf8] sm:$0xff] }
  0x91   :  { %v775_v38 = vpack.c.bf16 %v385_v36, %v383_v35  ;;  %774 = vmatpush1.bf16.msra.mxu0 %v773_v37  ;;  %v807_v35 = vpack.c.bf16 %v417_v34, %v415_v33  ;;  %v414_v36 = vld [vmem:[#allocation8 + $0x1e0] sm:$0xff]  ;;  %v416_v37 = vld [vmem:[#allocation8 + $0x1f0] sm:$0xff]  ;;  %v418_v34 = vld [vmem:[%s1164_s6] sm:$0x3]  ;;  %s619_s6 = sshll.u32 %s1004_s13, 4  ;;  %s620_s6 = int_to_ptr.vmem [resolvable:$true] %s619_s6 }
  0x92   :  { %s964_s1 = scalar_lea.vmem %s620_s6, 128  ;;  %p969_p13 = scmp.lt.s32.totalorder %s620_s6, %s620_s6 }
  0x93   :  { %734 = vmatpush1.bf16.msra.mxu1 %v733_v41  ;;  %v387_v41 = vld [vmem:[#allocation8 + $0x108] sm:$0xff]  ;;  %776 = vmatprep.subr.bf16.mxu0 %v775_v38  ;;  %v809_v38 = vpack.c.bf16 %v416_v37, %v414_v36  ;;  %v427_v36 = vrot.slane %v418_v34, %v1129_v21  ;;  %p965_p12 = scmp.ne.s32.totalorder %s620_s6, %s964_s1  ;;  %p970_p0 = scmp.lt.s32.totalorder %s964_s1, %s964_s1 }
  0x94   :  { %736 = vmatprep.subr.bf16.mxu1 %v735_v42  ;;  %v389_v42 = vld [vmem:[#allocation8 + $0x118] sm:$0xff] }
  0x95   :  { %v779_v44 = vpack.c.bf16 %v389_v42, %v387_v41  ;;  %778 = vmatpush1.bf16.msra.mxu0 %v777_v43  ;;  %v503_v41 = vld [vmem:[#allocation10] sm:$0xff]  ;;  %v811_v42 = vpack.c.bf16 %v520_v40, %v519_v39  ;;  %v504_v43 = vld [vmem:[#allocation10 + $0x8] sm:$0xff]  ;;  %p971_p1 = por %p970_p0, %p969_p13 }
  0x96   :  { %v813_v46 = vpack.c.bf16 %v504_v43, %v503_v41 }
  0x97   :  { %738 = vmatpush1.bf16.msra.mxu1 %v737_v47  ;;  %v391_v47 = vld [vmem:[#allocation8 + $0x128] sm:$0xff]  ;;  %780 = vmatprep.subr.bf16.mxu0 %v779_v44  ;;  %v521_v44 = vld [vmem:[#allocation10 + $0x90] sm:$0xff]  ;;  %p972_p2 = pnand %p971_p1, %p965_p12 }
  0x98   :  { %740 = vmatprep.subr.bf16.mxu1 %v739_v48  ;;  %v393_v48 = vld [vmem:[#allocation8 + $0x138] sm:$0xff] }
  0x99   :  { %v783_v50 = vpack.c.bf16 %v393_v48, %v391_v47  ;;  %782 = vmatpush1.bf16.msra.mxu0 %v781_v49  ;;  %v815_v47 = vpack.c.bf16 %v522_v45, %v521_v44  ;;  %v505_v48 = vld [vmem:[#allocation10 + $0x10] sm:$0xff]  ;;  %v506_v49 = vld [vmem:[#allocation10 + $0x18] sm:$0xff] }
  0x9a   :  { %v631_v44 = vld [vmem:[%s1166_s8] ss:$0 sm:$0xff] }
  0x9b   :  { %742 = vmatpush1.bf16.msra.mxu1 %v741_v51  ;;  %v390_v51 = vld [vmem:[#allocation8 + $0x120] sm:$0xff]  ;;  %784 = vmatprep.subr.bf16.mxu0 %v783_v50 }
  0x9c   :  { %744 = vmatprep.subr.bf16.mxu1 %v743_v54  ;;  %v397_v54 = vld [vmem:[#allocation8 + $0x158] sm:$0xff]  ;;  %v785_v55 = vpack.c.bf16 %v392_v52, %v390_v51  ;;  %v523_v50 = vld [vmem:[#allocation10 + $0xa0] sm:$0xff]  ;;  %v524_v51 = vld [vmem:[#allocation10 + $0xa8] sm:$0xff]  ;;  %v817_v52 = vpack.c.bf16 %v506_v49, %v505_v48 }
  0x9d   :  { %v787_v56 = vpack.c.bf16 %v397_v54, %v395_v53  ;;  %v819_v53 = vpack.c.bf16 %v524_v51, %v523_v50  ;;  %v507_v54 = vld [vmem:[#allocation10 + $0x20] sm:$0xff] }
  0x9e   :  { %786 = vmatpush1.bf16.msra.mxu0 %v785_v55  ;;  %v508_v55 = vld [vmem:[#allocation10 + $0x28] sm:$0xff] }
  0x9f   :  { %746 = vmatpush1.bf16.msra.mxu1 %v745_v57  ;;  %v394_v57 = vld [vmem:[#allocation8 + $0x140] sm:$0xff]  ;;  %788 = vmatprep.subr.bf16.mxu0 %v787_v56  ;;  %v525_v56 = vld [vmem:[#allocation10 + $0xb0] sm:$0xff] }
  0xa0   :  { %v789_v61 = vpack.c.bf16 %v396_v58, %v394_v57  ;;  %812 = vmatprep.subr.bf16.mxu1 %v811_v42  ;;  %v526_v57 = vld [vmem:[#allocation10 + $0xb8] sm:$0xff]  ;;  %v821_v58 = vpack.c.bf16 %v508_v55, %v507_v54 }
  0xa1   :  { %v823_v59 = vpack.c.bf16 %v526_v57, %v525_v56 }
  0xa2   :  { %790 = vmatpush1.bf16.msra.mxu0 %v789_v61  ;;  %v510_v61 = vld [vmem:[#allocation10 + $0x38] sm:$0xff] }
  0xa3   :  { %792 = vmatprep.subr.bf16.mxu0 %v791_v62  ;;  %v527_v62 = vld [vmem:[#allocation10 + $0xc0] sm:$0xff]  ;;  %v825_v0 = vpack.c.bf16 %v510_v61, %v509_v60 }
  0xa4   :  { %v827_v1 = vpack.c.bf16 %v528_v63, %v527_v62 }
  0xa6   :  { %794 = vmatpush1.bf16.msra.mxu0 %v793_v3  ;;  %v512_v3 = vld [vmem:[#allocation10 + $0x48] sm:$0xff] }
  0xa7   :  { %796 = vmatprep.subr.bf16.mxu0 %v795_v4  ;;  %v529_v4 = vld [vmem:[#allocation10 + $0xd0] sm:$0xff]  ;;  %v829_v6 = vpack.c.bf16 %v512_v3, %v511_v2 }
  0xa8   :  { %v831_v7 = vpack.c.bf16 %v530_v5, %v529_v4 }
  0xaa   :  { %798 = vmatpush1.bf16.msra.mxu0 %v797_v9  ;;  %v514_v9 = vld [vmem:[#allocation10 + $0x58] sm:$0xff] }
  0xab   :  { %800 = vmatprep.subr.bf16.mxu0 %v799_v10  ;;  %v531_v10 = vld [vmem:[#allocation10 + $0xe0] sm:$0xff]  ;;  %v833_v12 = vpack.c.bf16 %v514_v9, %v513_v8 }
  0xac   :  { %v835_v13 = vpack.c.bf16 %v532_v11, %v531_v10 }
  0xae   :  { %802 = vmatpush1.bf16.msra.mxu0 %v801_v15  ;;  %v274_v15 = vrot.slane %v269_v14, %v1124_v19 }
  0xaf   :  { %804 = vmatprep.subr.bf16.mxu0 %v803_v16  ;;  %v278_v16 = vrot.slane %v269_v14, %v1129_v21 }
  0xb2   :  { %806 = vmatpush1.bf16.msra.mxu0 %v805_v32  ;;  %v518_v32 = vld [vmem:[#allocation10 + $0x78] sm:$0xff] }
  0xb3   :  { %808 = vmatprep.subr.bf16.mxu0 %v807_v35  ;;  %v841_v33 = vpack.c.bf16 %v518_v32, %v517_v31  ;;  %v423_v35 = vrot.slane %v418_v34, %v1124_v19 }
  0xb6   :  { %810 = vmatpush1.bf16.msra.mxu0 %v809_v38 }
 0x140   :  { %v198_v24 = vpop.f32.mrb[0].mxu0 }
 0x141   :  { %v199_v25 = vadd.f32 %v198_v24, %v121_v22  ;;  %v200_v26 = vpop.f32.mrb[1].mxu0 }
 0x142   :  { %v201_v27 = vadd.f32 %v200_v26, %v125_v23  ;;  %v516_v26 = vld [vmem:[#allocation10 + $0x68] sm:$0xff] }
 0x143   :  { %v203_v29 = vmax.f32 %v199_v25, 0.0  ;;  %v515_v25 = vld [vmem:[#allocation10 + $0x60] sm:$0xff] }
 0x144   :  { %v204_v28 = vmax.f32 %v201_v27, 0.0  ;;  %v837_v27 = vpack.c.bf16 %v516_v26, %v515_v25 }
 0x146   :  { %345 = vmatprep.mubr.f32.mxu1 %v204_v28  ;;  %v533_v28 = vld [vmem:[#allocation10 + $0xf0] sm:$0xff] }
 0x147   :  { %346 = vmatmul.mubr.f32.vlgmr.msra.gmra.mrb[0].mxu1 %v203_v29  ;;  %v534_v29 = vld [vmem:[#allocation10 + $0xf8] sm:$0xff] }
 0x148   :  { %814 = vmatpush3.bf16.msra.mxu1 %v813_v46  ;;  %v839_v30 = vpack.c.bf16 %v534_v29, %v533_v28 }
 0x149   :  { %816 = vmatprep.subr.bf16.mxu1 %v815_v47 }
 0x14c   :  { %818 = vmatpush3.bf16.msra.mxu1 %v817_v52 }
 0x14d   :  { %820 = vmatprep.subr.bf16.mxu1 %v819_v53 }
 0x150   :  { %822 = vmatpush3.bf16.msra.mxu1 %v821_v58 }
 0x151   :  { %824 = vmatprep.subr.bf16.mxu1 %v823_v59 }
 0x154   :  { %826 = vmatpush3.bf16.msra.mxu1 %v825_v0 }
 0x155   :  { %828 = vmatprep.subr.bf16.mxu1 %v827_v1 }
 0x158   :  { %830 = vmatpush3.bf16.msra.mxu1 %v829_v6 }
 0x159   :  { %832 = vmatprep.subr.bf16.mxu1 %v831_v7 }
 0x15c   :  { %834 = vmatpush3.bf16.msra.mxu1 %v833_v12 }
 0x15d   :  { %836 = vmatprep.subr.bf16.mxu1 %v835_v13 }
 0x160   :  { %838 = vmatpush3.bf16.msra.mxu1 %v837_v27 }
 0x161   :  { %840 = vmatprep.subr.bf16.mxu1 %v839_v30 }
 0x164   :  { %842 = vmatpush3.bf16.msra.mxu1 %v841_v33 }
 0x21a   :  { %v347_v17 = vpop.f32.mrb[0].mxu1 }
 0x21b   :  { %v348_v18 = vadd.f32 %v347_v17, %v274_v15  ;;  %v349_v20 = vpop.f32.mrb[1].mxu1 }
 0x21c   :  { %v350_v22 = vadd.f32 %v349_v20, %v278_v16 }
 0x21d   :  { %v352_v24 = vmax.f32 %v348_v18, 0.0 }
 0x21e   :  { %v353_v23 = vmax.f32 %v350_v22, 0.0 }
 0x220   :  { %494 = vmatprep.mubr.f32.mxu0 %v353_v23 }
 0x221   :  { %495 = vmatmul.mubr.f32.vlgmr.msra.gmra.mrb[2].mxu0 %v352_v24 }
 0x2f4   :  { %v496_v37 = vpop.f32.mrb[2].mxu0 }
 0x2f5   :  { %v497_v38 = vadd.f32 %v496_v37, %v423_v35  ;;  %v498_v39 = vpop.f32.mrb[3].mxu0 }
 0x2f6   :  { %v499_v40 = vadd.f32 %v498_v39, %v427_v36 }
 0x2f7   :  { %v501_v42 = vmax.f32 %v497_v38, 0.0 }
 0x2f8   :  { %v502_v41 = vmax.f32 %v499_v40, 0.0 }
 0x2fa   :  { %606 = vmatprep.mubr.f32.mxu1 %v502_v41 }
 0x2fb   :  { %607 = vmatmul.mubr.f32.vlgmr.msra.gmra.mrb[2].mxu1 %v501_v42 }
 0x3ce   :  { %v664_v43 = vpop.f32.mrb[2].mxu1 }
 0x3cf   :  { %v665_v45 = vpop.f32.mrb[3].mxu1 }
 0x3d0   :  { %v666_v46 = vadd.f32 %v665_v45, %v664_v43 }
 0x3d2   :  { %v609_v19 = vadd.f32 %v666_v46, %v631_v44 }
 0x3d4   :  { %612 = vst [vmem:[#allocation11] sm:$0xff] %v609_v19 }
 0x3d5   :  { %975 = shalt.err (!%p972_p2)
}
 0x3d6   :  { %s976_s15 = scalar_lea.hbm %s1167_s9, 128 }
 0x3d7   :  { %p977_p3 = scmp.ne.s32.totalorder %s1167_s9, %s976_s15  ;;  %p980_p4 = scmp.lt.u32.totalorder %s976_s15, %s1167_s9 }
 0x3d9   :  { %p982_p5 = pnand %p980_p4, %p977_p3 }
 0x3db   :  { %985 = shalt.err (!%p982_p5)
}
 0x3dc   :  { %622 = dma.vmem_to_hbm [thread:$0]  %s620_s6, 128, %s1167_s9, [#allocation4]  }
 0x3dd   :  { %992 = dma.done.wait [#allocation4], 128  }
 0x3de   :  { %993 = vsyncadd [#allocation4], 4294967168 }
 0x3df   :  { %626 = vsyncpa [#allocation3], 1 }
 0x3e0   :  { %627 = vsyncpa [#allocation6], 1 }
 0x3e1   :  { %628 = vsyncpa [#allocation9], 1 }
 0x3e2   :  { %629 = vsyncpa [#allocation4], 1 }

</bundles_post_ra>
